<compile_context>
chip_gen: v6e
topology: v6e:2x2x1
jax: 0.10.0
libtpu: 0.0.40
codegen_flags: <defaults>
</compile_context>

<pallas_src>
import numpy as np
import jax
import jax.numpy as jnp
from jax.experimental import pallas as pl
from jax.experimental.pallas import tpu as pltpu


_EPS = 1e-5
_PAD = 8      # sublane-aligned top padding rows inside the activation scratch


# ----------------------------------------------------------------------------
# Fused kernel
# ----------------------------------------------------------------------------
def _make_fused_kernel(nb, H, W, cins, cout):
    """Fused kernel for one batch block of `nb` images (all shapes static).

    Ref order:
      x_ref  : (nb, H, W*cins[0])            f32   channels-packed input block
      w_ref  : (L, 3*W*max(cins), W*cout)    bf16  fused banded conv weights
      ss_ref : (L, 2, W*cout)                f32   [scale ; shift] per layer
      ah_ref : (nb*2H, nb*H)                 bf16  kron(I_nb, Ah)
      bw_ref : (W*cout, 2*W*cout)            bf16  kron(Aw^T, I_cout)
      o_ref  : (nb, 2H, 2*W*cout)            f32
      pbuf   : (nb, _PAD+H+_PAD, W*cmax)     f32   VMEM activation scratch
    """
    n_layers = len(cins)
    nbH = nb * H
    wcout = W * cout

    def kernel(x_ref, w_ref, ss_ref, ah_ref, bw_ref, o_ref, pbuf):
        # Zero only the two pad rows the vertical taps actually read (rows
        # _PAD-1 and _PAD+H of every image) -- done every step instead of a
        # program_id==0 guard so correctness is preserved if the "parallel"
        # batch axis is split across TensorCores (per-core scratch copies).
        zrow = jnp.zeros((nb, 1, pbuf.shape[2]), pbuf.dtype)
        pbuf[:, _PAD - 1:_PAD, :] = zrow
        pbuf[:, _PAD + H:_PAD + H + 1, :] = zrow

        act = x_ref[...].reshape(nbH, W * cins[0])           # f32 (nb*H, W*cin0)

        for l in range(n_layers):
            wcin = W * cins[l]
            # Layer input -> padded scratch (store starts at sublane offset 8).
            pbuf[:, _PAD:_PAD + H, 0:wcin] = act.reshape(nb, H, wcin)

            # Fused vertical taps: one (nb*H, 3*W*cin) x (3*W*cin, W*cout) MXU
            # matmul per layer (bf16 operands, f32 accumulation).
            t0 = pbuf[:, _PAD - 1:_PAD - 1 + H, 0:wcin].reshape(nbH, wcin)
            t1 = pbuf[:, _PAD:_PAD + H, 0:wcin].reshape(nbH, wcin)
            t2 = pbuf[:, _PAD + 1:_PAD + 1 + H, 0:wcin].reshape(nbH, wcin)
            lhs = jnp.concatenate([t0, t1, t2], axis=1).astype(jnp.bfloat16)
            acc = jnp.dot(lhs, w_ref[l, 0:3 * wcin, :],
                          preferred_element_type=jnp.float32)  # (nb*H, W*cout)

            # Folded BatchNorm(eval) + conv bias + ReLU (f32 on the VPU).
            ssl = ss_ref[l]                                    # (2, W*cout)
            act = jnp.maximum(acc * ssl[0:1, :] + ssl[1:2, :], 0.0)

        # Bilinear 2x upsample (align_corners=True), batch kept stacked in M:
        # rows via block-diagonal kron(I_nb, Ah), cols via kron(Aw^T, I_C).
        th = jnp.dot(ah_ref[...], act.astype(jnp.bfloat16),
                     preferred_element_type=jnp.float32)       # (nb*2H, W*cout)
        out = jnp.dot(th.astype(jnp.bfloat16), bw_ref[...],
                      preferred_element_type=jnp.float32)      # (nb*2H, 2W*cout)
        o_ref[...] = out.reshape(nb, 2 * H, 2 * wcout).astype(o_ref.dtype)

    return kernel


def _invariant_spec(shape):
    """BlockSpec for a grid-invariant operand (constant index_map).

    Single-buffered: a second pipeline buffer is pure VMEM waste for an
    operand whose block never changes (matters on v7x's 64 MiB VMEM)."""
    index_map = lambda n: (0,) * len(shape)
    try:
        return pl.BlockSpec(shape, index_map, pipeline_mode=pl.Buffered(1))
    except (TypeError, AttributeError):   # Pallas version without pipeline_mode
        return pl.BlockSpec(shape, index_map)


def upconv_block_apply_packed(x_packed, prepared, cfg):
    """Fused UpConvBlock on channels-packed input.

    x_packed: (N, H, W*Cin) f32 -> (N, 2H, 2W*Cout) f32.  Keeping the packed
    layout end-to-end avoids the NCHW<->NHWC transposes (each a full extra
    HBM read+write pass) around the kernel.
    """
    nb, H, W = cfg["nb"], cfg["H"], cfg["W"]
    cins, cout = list(cfg["cins"]), cfg["cout"]
    N = x_packed.shape[0]
    assert N % nb == 0, (N, nb)
    cmax = max(cins + [cout])
    Ho, Wo = 2 * H, 2 * W * cout

    wstack, ssstack = prepared["wstack"], prepared["ssstack"]
    ah_block, bw = prepared["ah_block"], prepared["bw"]

    kernel = _make_fused_kernel(nb, H, W, cins, cout)
    return pl.pallas_call(
        kernel,
        out_shape=jax.ShapeDtypeStruct((N, Ho, Wo), x_packed.dtype),
        grid=(N // nb,),
        in_specs=[
            pl.BlockSpec((nb, H, W * cins[0]), lambda n: (n, 0, 0)),
            _invariant_spec(wstack.shape),
            _invariant_spec(ssstack.shape),
            _invariant_spec(ah_block.shape),
            _invariant_spec(bw.shape),
        ],
        out_specs=pl.BlockSpec((nb, Ho, Wo), lambda n: (n, 0, 0)),
        scratch_shapes=[pltpu.VMEM((nb, _PAD + H + _PAD, W * cmax), jnp.float32)],
        compiler_params=pltpu.CompilerParams(
            dimension_semantics=("parallel",),
            vmem_limit_bytes=64 * 1024 * 1024),
    )(x_packed, wstack, ssstack, ah_block, bw)


def upconv_block_forward_nchw(x_nchw, prepared, cfg):
    """NCHW-in / NCHW-out convenience wrapper (PyTorch layout parity only).
    Prefer upconv_block_apply_packed end-to-end in a real model."""
    N, cin0, H, W = x_nchw.shape
    cout = cfg["cout"]
    xp = jnp.transpose(x_nchw, (0, 2, 3, 1)).reshape(N, H, W * cin0)
    op = upconv_block_apply_packed(xp, prepared, cfg)
    out = op.reshape(N, 2 * H, 2 * W, cout)
    return jnp.transpose(out, (0, 3, 1, 2))


# ----------------------------------------------------------------------------
# Host-side parameter preparation
# ----------------------------------------------------------------------------
def _init_conv_bn(key, cin, cout):
    kw, kb, kg, kbe, km, kv = jax.random.split(key, 6)
    w = 0.1 * jax.random.normal(kw, (3, 3, cin, cout), jnp.float32)   # HWIO
    b = 0.1 * jax.random.normal(kb, (cout,), jnp.float32)
    gamma = 1.0 + 0.1 * jax.random.normal(kg, (cout,), jnp.float32)
    beta = 0.1 * jax.random.normal(kbe, (cout,), jnp.float32)
    mean = 0.1 * jax.random.normal(km, (cout,), jnp.float32)
    var = 0.9 + 0.1 * jnp.abs(jax.random.normal(kv, (cout,), jnp.float32))
    scale = gamma / jnp.sqrt(var + _EPS)
    shift = beta + (b - mean) * scale
    return w, scale, shift


def init_upconv_params(key, in_channels, out_channels, n_conv):
    n_conv = max(int(n_conv), 1)                 # module clamps n_conv >= 1
    params, cin = [], in_channels
    for k in jax.random.split(key, n_conv):
        params.append(_init_conv_bn(k, cin, out_channels))
        cin = out_channels
    return params


def _band_weights(w_hwio, W):
    """(3,3,Cin,Cout) HWIO kernel -> (3, W*Cin, W*Cout) banded matrices.

    band[dh][j*Cin:(j+1)*Cin, x*Cout:(x+1)*Cout] = w[dh, dw] with j = x+dw-1.
    Out-of-range width taps are simply absent (zero 'same' padding)."""
    kh, kw, cin, cout = w_hwio.shape
    band = np.zeros((kh, W * cin, W * cout), np.float32)
    for dh in range(kh):
        for dw in range(kw):
            for x in range(W):
                j = x + dw - 1
                if 0 <= j < W:
                    band[dh, j * cin:(j + 1) * cin,
                         x * cout:(x + 1) * cout] = w_hwio[dh, dw]
    return band


def _interp_matrix(n_in, n_out):
    """Bilinear interpolation matrix, align_corners=True (UpsamplingBilinear2d)."""
    if n_in == 1:
        return np.ones((n_out, 1), np.float32)
    src = np.arange(n_out, dtype=np.float64) * (n_in - 1) / (n_out - 1)
    i0 = np.clip(np.floor(src).astype(np.int64), 0, n_in - 1)
    i1 = np.clip(i0 + 1, 0, n_in - 1)
    w1 = src - i0
    a = np.zeros((n_out, n_in), np.float64)
    a[np.arange(n_out), i0] += 1.0 - w1
    a[np.arange(n_out), i1] += w1
    return a.astype(np.float32)


def _pick_batch_block(n, h, target_m=256, min_m=128):
    """Largest divisor Nb of n with Nb*h <= target_m (MXU height on v6e/v7x);
    keep a grid of >= 2 steps (both v7x TensorCores busy) when that still
    leaves Nb*h >= min_m."""
    divisors = [d for d in range(1, n + 1) if n % d == 0]
    nb = max([d for d in divisors if d * h <= target_m] or [1])
    if n // nb < 2:
        smaller = [d for d in divisors if d < nb and d * h >= min_m]
        if smaller:
            nb = max(smaller)
    return nb


def prepare_upconv(params, *, N, H, W):
    """Host-side precompute: fused banded weights (bf16), tiled BN affine
    (f32), bilinear interp matrices (bf16), batch-block size."""
    cins = [int(p[0].shape[2]) for p in params]
    cout = int(params[-1][0].shape[3])
    n_layers = len(params)
    nb = _pick_batch_block(N, H)
    kmax = 3 * W * max(cins)

    wstack = np.zeros((n_layers, kmax, W * cout), np.float32)
    ssstack = np.zeros((n_layers, 2, W * cout), np.float32)
    for l, (w, scale, shift) in enumerate(params):
        cin = cins[l]
        band = _band_weights(np.asarray(w, np.float32), W)      # (3, Wc, WC)
        wstack[l, :3 * W * cin, :] = band.reshape(3 * W * cin, W * cout)
        ssstack[l, 0, :] = np.tile(np.asarray(scale, np.float32), W)
        ssstack[l, 1, :] = np.tile(np.asarray(shift, np.float32), W)

    ah = _interp_matrix(H, 2 * H)                                # (2H, H)
    aw = _interp_matrix(W, 2 * W)                                # (2W, W)
    ah_block = np.kron(np.eye(nb, dtype=np.float32), ah)        # (nb*2H, nb*H)
    bw = np.kron(aw.T, np.eye(cout, dtype=np.float32))          # (W*C, 2W*C)

    prepared = dict(
        wstack=jnp.asarray(wstack, jnp.bfloat16),
        ssstack=jnp.asarray(ssstack, jnp.float32),
        ah_block=jnp.asarray(ah_block, jnp.bfloat16),
        bw=jnp.asarray(bw, jnp.bfloat16),
    )
    cfg = dict(nb=nb, H=H, W=W, cins=tuple(cins), cout=cout)
    return prepared, cfg


# ----------------------------------------------------------------------------
# Pure-JAX reference (f32, HIGHEST precision) for correctness sanity check
# ----------------------------------------------------------------------------
def _reference_forward(x_nchw, params, ah, aw):
    x = jnp.transpose(x_nchw, (0, 2, 3, 1))
    for w, scale, shift in params:
        y = jax.lax.conv_general_dilated(
            x, w, (1, 1), ((1, 1), (1, 1)),
            dimension_numbers=("NHWC", "HWIO", "NHWC"),
            precision=jax.lax.Precision.HIGHEST)
        x = jnp.maximum(y * scale.reshape(1, 1, 1, -1)
                        + shift.reshape(1, 1, 1, -1), 0.0)
    t = jnp.einsum("oh,nhwc->nowc", ah, x, precision=jax.lax.Precision.HIGHEST)
    t = jnp.einsum("pw,nowc->nopc", aw, t, precision=jax.lax.Precision.HIGHEST)
    return jnp.transpose(t, (0, 3, 1, 2))


# ----------------------------------------------------------------------------
if __name__ == "__main__":
    N, C_IN, C_OUT, H, W = 2, 4, 8, 16, 16
    N_CONV = 3

    key = jax.random.PRNGKey(0)
    kx, kp = jax.random.split(key)
    x = jax.random.normal(kx, (N, C_IN, H, W), jnp.float32)      # NCHW (spec)

    params = init_upconv_params(kp, C_IN, C_OUT, N_CONV)
    prepared, cfg = prepare_upconv(params, N=N, H=H, W=W)

    # Primary path: packed (N, H, W*C) layout end-to-end (no layout transposes
    # around the kernel).
    x_packed = jnp.transpose(x, (0, 2, 3, 1)).reshape(N, H, W * C_IN)
    fwd = jax.jit(lambda xp: upconv_block_apply_packed(xp, prepared, cfg))
    out_packed = jax.block_until_ready(fwd(x_packed))
    assert out_packed.shape == (N, 2 * H, 2 * W * C_OUT), out_packed.shape

    # Reference in f32/HIGHEST.  The kernel uses bf16 MXU operands with f32
    # accumulation, so tolerance is set for bf16 operand rounding (~1e-3 rel
    # per matmul, compounded over 3 conv layers + 2 upsample matmuls).
    ah = jnp.asarray(_interp_matrix(H, 2 * H))
    aw = jnp.asarray(_interp_matrix(W, 2 * W))
    ref_nchw = jax.block_until_ready(_reference_forward(x, params, ah, aw))
    ref_packed = jnp.transpose(ref_nchw, (0, 2, 3, 1)).reshape(
        N, 2 * H, 2 * W * C_OUT)
    np.testing.assert_allclose(np.asarray(out_packed), np.asarray(ref_packed),
                               rtol=2e-2, atol=2e-2)

    # NCHW convenience wrapper (PyTorch-layout parity).
    out_nchw = jax.block_until_ready(
        jax.jit(lambda a: upconv_block_forward_nchw(a, prepared, cfg))(x))
    assert out_nchw.shape == (N, C_OUT, 2 * H, 2 * W), out_nchw.shape
    np.testing.assert_allclose(np.asarray(out_nchw), np.asarray(ref_nchw),
                               rtol=2e-2, atol=2e-2)

    print("KERNEL_OK")
</pallas_src>

<mosaic_0001>
module attributes {stable_mosaic.version = 11 : i64} {
  func.func @kernel(%arg0: i32, %arg1: memref<2x16x64xf32, #tpu.memory_space<vmem>>, %arg2: memref<3x384x128xbf16, #tpu.memory_space<vmem>>, %arg3: memref<3x2x128xf32, #tpu.memory_space<vmem>>, %arg4: memref<64x32xbf16, #tpu.memory_space<vmem>>, %arg5: memref<128x256xbf16, #tpu.memory_space<vmem>>, %arg6: memref<2x32x256xf32, #tpu.memory_space<vmem>>, %arg7: memref<2x32x128xf32, #tpu.memory_space<vmem>>) attributes {dimension_semantics = [#tpu.dimension_semantics<parallel>], iteration_bounds = array<i64: 1>, scalar_prefetch = 0 : i64, scratch_operands = 1 : i64, tpu.core_type = #tpu.core_type<tc>, window_params = [{transform_indices = @transform_0, window_bounds = array<i64: 2, 16, 64>}, {pipeline_mode = #tpu.pipeline_mode<synchronous>, transform_indices = @transform_1, window_bounds = array<i64: 3, 384, 128>}, {pipeline_mode = #tpu.pipeline_mode<synchronous>, transform_indices = @transform_2, window_bounds = array<i64: 3, 2, 128>}, {pipeline_mode = #tpu.pipeline_mode<synchronous>, transform_indices = @transform_3, window_bounds = array<i64: 64, 32>}, {pipeline_mode = #tpu.pipeline_mode<synchronous>, transform_indices = @transform_4, window_bounds = array<i64: 128, 256>}, {transform_indices = @transform_5, window_bounds = array<i64: 2, 32, 256>}]} {
    %cst = arith.constant 0.000000e+00 : f32
    %0 = vector.broadcast %cst : f32 to vector<2x1x128xf32>
    %c0 = arith.constant 0 : index
    %c7 = arith.constant 7 : index
    %c0_0 = arith.constant 0 : index
    %1 = vector.load %arg7[%c0, %c7, %c0_0] : memref<2x32x128xf32, #tpu.memory_space<vmem>>, vector<2x1x128xf32>
    tpu.vector_store %arg7[%c0, %c7, %c0_0], %0 {strides = array<i32>} : memref<2x32x128xf32, #tpu.memory_space<vmem>>, vector<2x1x128xf32>,
    %c0_1 = arith.constant 0 : index
    %c24 = arith.constant 24 : index
    %c0_2 = arith.constant 0 : index
    %2 = vector.load %arg7[%c0_1, %c24, %c0_2] : memref<2x32x128xf32, #tpu.memory_space<vmem>>, vector<2x1x128xf32>
    tpu.vector_store %arg7[%c0_1, %c24, %c0_2], %0 {strides = array<i32>} : memref<2x32x128xf32, #tpu.memory_space<vmem>>, vector<2x1x128xf32>,
    %c0_3 = arith.constant 0 : index
    %c0_4 = arith.constant 0 : index
    %c0_5 = arith.constant 0 : index
    %3 = vector.load %arg1[%c0_3, %c0_4, %c0_5] : memref<2x16x64xf32, #tpu.memory_space<vmem>>, vector<2x16x64xf32>
    %4 = vector.shape_cast %3 : vector<2x16x64xf32> to vector<32x64xf32>
    %5 = vector.shape_cast %4 : vector<32x64xf32> to vector<2x16x64xf32>
    %c0_6 = arith.constant 0 : index
    %c8 = arith.constant 8 : index
    %c0_7 = arith.constant 0 : index
    %6 = vector.load %arg7[%c0_6, %c8, %c0_7] : memref<2x32x128xf32, #tpu.memory_space<vmem>>, vector<2x16x64xf32>
    tpu.vector_store %arg7[%c0_6, %c8, %c0_7], %5 {strides = array<i32>} : memref<2x32x128xf32, #tpu.memory_space<vmem>>, vector<2x16x64xf32>,
    %c0_8 = arith.constant 0 : index
    %c7_9 = arith.constant 7 : index
    %c0_10 = arith.constant 0 : index
    %7 = vector.load %arg7[%c0_8, %c7_9, %c0_10] : memref<2x32x128xf32, #tpu.memory_space<vmem>>, vector<2x16x64xf32>
    %8 = vector.shape_cast %7 : vector<2x16x64xf32> to vector<32x64xf32>
    %c0_11 = arith.constant 0 : index
    %c8_12 = arith.constant 8 : index
    %c0_13 = arith.constant 0 : index
    %9 = vector.load %arg7[%c0_11, %c8_12, %c0_13] : memref<2x32x128xf32, #tpu.memory_space<vmem>>, vector<2x16x64xf32>
    %10 = vector.shape_cast %9 : vector<2x16x64xf32> to vector<32x64xf32>
    %c0_14 = arith.constant 0 : index
    %c9 = arith.constant 9 : index
    %c0_15 = arith.constant 0 : index
    %11 = vector.load %arg7[%c0_14, %c9, %c0_15] : memref<2x32x128xf32, #tpu.memory_space<vmem>>, vector<2x16x64xf32>
    %12 = vector.shape_cast %11 : vector<2x16x64xf32> to vector<32x64xf32>
    %13 = tpu.concatenate %8, %10, %12 in 1 : vector<32x64xf32>, vector<32x64xf32>, vector<32x64xf32> -> vector<32x192xf32>
    %14 = arith.truncf %13 : vector<32x192xf32> to vector<32x192xbf16>
    %c0_16 = arith.constant 0 : index
    %c0_17 = arith.constant 0 : index
    %c0_18 = arith.constant 0 : index
    %15 = vector.load %arg2[%c0_16, %c0_17, %c0_18] : memref<3x384x128xbf16, #tpu.memory_space<vmem>>, vector<1x192x128xbf16>
    %16 = vector.shape_cast %15 : vector<1x192x128xbf16> to vector<192x128xbf16>
    %cst_19 = arith.constant dense<0.000000e+00> : vector<32x128xf32>
    %17 = tpu.matmul %14, %16, %cst_19 {dimension_numbers = #tpu.dot_dimension_numbers<[1], [0], [0], [1], [0, 0, 1, 1], [], []>} : vector<32x192xbf16>, vector<192x128xbf16>, vector<32x128xf32> -> vector<32x128xf32>
    %c0_20 = arith.constant 0 : index
    %c0_21 = arith.constant 0 : index
    %c0_22 = arith.constant 0 : index
    %18 = vector.load %arg3[%c0_20, %c0_21, %c0_22] : memref<3x2x128xf32, #tpu.memory_space<vmem>>, vector<1x2x128xf32>
    %19 = vector.shape_cast %18 : vector<1x2x128xf32> to vector<2x128xf32>
    %20 = vector.extract_strided_slice %19 {offsets = [0, 0], sizes = [1, 128], strides = [1, 1]} : vector<2x128xf32> to vector<1x128xf32>
    %21 = vector.broadcast %20 : vector<1x128xf32> to vector<32x128xf32>
    %22 = arith.mulf %17, %21 : vector<32x128xf32>
    %23 = vector.extract_strided_slice %19 {offsets = [1, 0], sizes = [1, 128], strides = [1, 1]} : vector<2x128xf32> to vector<1x128xf32>
    %24 = vector.broadcast %23 : vector<1x128xf32> to vector<32x128xf32>
    %25 = arith.addf %22, %24 : vector<32x128xf32>
    %cst_23 = arith.constant 0.000000e+00 : f32
    %26 = vector.broadcast %cst_23 : f32 to vector<32x128xf32>
    %27 = arith.maximumf %25, %26 : vector<32x128xf32>
    %28 = vector.shape_cast %27 : vector<32x128xf32> to vector<2x16x128xf32>
    %c0_24 = arith.constant 0 : index
    %c8_25 = arith.constant 8 : index
    %c0_26 = arith.constant 0 : index
    %29 = vector.load %arg7[%c0_24, %c8_25, %c0_26] : memref<2x32x128xf32, #tpu.memory_space<vmem>>, vector<2x16x128xf32>
    tpu.vector_store %arg7[%c0_24, %c8_25, %c0_26], %28 {strides = array<i32>} : memref<2x32x128xf32, #tpu.memory_space<vmem>>, vector<2x16x128xf32>,
    %c0_27 = arith.constant 0 : index
    %c7_28 = arith.constant 7 : index
    %c0_29 = arith.constant 0 : index
    %30 = vector.load %arg7[%c0_27, %c7_28, %c0_29] : memref<2x32x128xf32, #tpu.memory_space<vmem>>, vector<2x16x128xf32>
    %31 = vector.shape_cast %30 : vector<2x16x128xf32> to vector<32x128xf32>
    %c0_30 = arith.constant 0 : index
    %c8_31 = arith.constant 8 : index
    %c0_32 = arith.constant 0 : index
    %32 = vector.load %arg7[%c0_30, %c8_31, %c0_32] : memref<2x32x128xf32, #tpu.memory_space<vmem>>, vector<2x16x128xf32>
    %33 = vector.shape_cast %32 : vector<2x16x128xf32> to vector<32x128xf32>
    %c0_33 = arith.constant 0 : index
    %c9_34 = arith.constant 9 : index
    %c0_35 = arith.constant 0 : index
    %34 = vector.load %arg7[%c0_33, %c9_34, %c0_35] : memref<2x32x128xf32, #tpu.memory_space<vmem>>, vector<2x16x128xf32>
    %35 = vector.shape_cast %34 : vector<2x16x128xf32> to vector<32x128xf32>
    %36 = tpu.concatenate %31, %33, %35 in 1 : vector<32x128xf32>, vector<32x128xf32>, vector<32x128xf32> -> vector<32x384xf32>
    %37 = arith.truncf %36 : vector<32x384xf32> to vector<32x384xbf16>
    %c1 = arith.constant 1 : index
    %c0_36 = arith.constant 0 : index
    %c0_37 = arith.constant 0 : index
    %38 = vector.load %arg2[%c1, %c0_36, %c0_37] : memref<3x384x128xbf16, #tpu.memory_space<vmem>>, vector<1x384x128xbf16>
    %39 = vector.shape_cast %38 : vector<1x384x128xbf16> to vector<384x128xbf16>
    %cst_38 = arith.constant dense<0.000000e+00> : vector<32x128xf32>
    %40 = tpu.matmul %37, %39, %cst_38 {dimension_numbers = #tpu.dot_dimension_numbers<[1], [0], [0], [1], [0, 0, 1, 1], [], []>} : vector<32x384xbf16>, vector<384x128xbf16>, vector<32x128xf32> -> vector<32x128xf32>
    %c1_39 = arith.constant 1 : index
    %c0_40 = arith.constant 0 : index
    %c0_41 = arith.constant 0 : index
    %41 = vector.load %arg3[%c1_39, %c0_40, %c0_41] : memref<3x2x128xf32, #tpu.memory_space<vmem>>, vector<1x2x128xf32>
    %42 = vector.shape_cast %41 : vector<1x2x128xf32> to vector<2x128xf32>
    %43 = vector.extract_strided_slice %42 {offsets = [0, 0], sizes = [1, 128], strides = [1, 1]} : vector<2x128xf32> to vector<1x128xf32>
    %44 = vector.broadcast %43 : vector<1x128xf32> to vector<32x128xf32>
    %45 = arith.mulf %40, %44 : vector<32x128xf32>
    %46 = vector.extract_strided_slice %42 {offsets = [1, 0], sizes = [1, 128], strides = [1, 1]} : vector<2x128xf32> to vector<1x128xf32>
    %47 = vector.broadcast %46 : vector<1x128xf32> to vector<32x128xf32>
    %48 = arith.addf %45, %47 : vector<32x128xf32>
    %cst_42 = arith.constant 0.000000e+00 : f32
    %49 = vector.broadcast %cst_42 : f32 to vector<32x128xf32>
    %50 = arith.maximumf %48, %49 : vector<32x128xf32>
    %51 = vector.shape_cast %50 : vector<32x128xf32> to vector<2x16x128xf32>
    %c0_43 = arith.constant 0 : index
    %c8_44 = arith.constant 8 : index
    %c0_45 = arith.constant 0 : index
    %52 = vector.load %arg7[%c0_43, %c8_44, %c0_45] : memref<2x32x128xf32, #tpu.memory_space<vmem>>, vector<2x16x128xf32>
    tpu.vector_store %arg7[%c0_43, %c8_44, %c0_45], %51 {strides = array<i32>} : memref<2x32x128xf32, #tpu.memory_space<vmem>>, vector<2x16x128xf32>,
    %c0_46 = arith.constant 0 : index
    %c7_47 = arith.constant 7 : index
    %c0_48 = arith.constant 0 : index
    %53 = vector.load %arg7[%c0_46, %c7_47, %c0_48] : memref<2x32x128xf32, #tpu.memory_space<vmem>>, vector<2x16x128xf32>
    %54 = vector.shape_cast %53 : vector<2x16x128xf32> to vector<32x128xf32>
    %c0_49 = arith.constant 0 : index
    %c8_50 = arith.constant 8 : index
    %c0_51 = arith.constant 0 : index
    %55 = vector.load %arg7[%c0_49, %c8_50, %c0_51] : memref<2x32x128xf32, #tpu.memory_space<vmem>>, vector<2x16x128xf32>
    %56 = vector.shape_cast %55 : vector<2x16x128xf32> to vector<32x128xf32>
    %c0_52 = arith.constant 0 : index
    %c9_53 = arith.constant 9 : index
    %c0_54 = arith.constant 0 : index
    %57 = vector.load %arg7[%c0_52, %c9_53, %c0_54] : memref<2x32x128xf32, #tpu.memory_space<vmem>>, vector<2x16x128xf32>
    %58 = vector.shape_cast %57 : vector<2x16x128xf32> to vector<32x128xf32>
    %59 = tpu.concatenate %54, %56, %58 in 1 : vector<32x128xf32>, vector<32x128xf32>, vector<32x128xf32> -> vector<32x384xf32>
    %60 = arith.truncf %59 : vector<32x384xf32> to vector<32x384xbf16>
    %c2 = arith.constant 2 : index
    %c0_55 = arith.constant 0 : index
    %c0_56 = arith.constant 0 : index
    %61 = vector.load %arg2[%c2, %c0_55, %c0_56] : memref<3x384x128xbf16, #tpu.memory_space<vmem>>, vector<1x384x128xbf16>
    %62 = vector.shape_cast %61 : vector<1x384x128xbf16> to vector<384x128xbf16>
    %cst_57 = arith.constant dense<0.000000e+00> : vector<32x128xf32>
    %63 = tpu.matmul %60, %62, %cst_57 {dimension_numbers = #tpu.dot_dimension_numbers<[1], [0], [0], [1], [0, 0, 1, 1], [], []>} : vector<32x384xbf16>, vector<384x128xbf16>, vector<32x128xf32> -> vector<32x128xf32>
    %c2_58 = arith.constant 2 : index
    %c0_59 = arith.constant 0 : index
    %c0_60 = arith.constant 0 : index
    %64 = vector.load %arg3[%c2_58, %c0_59, %c0_60] : memref<3x2x128xf32, #tpu.memory_space<vmem>>, vector<1x2x128xf32>
    %65 = vector.shape_cast %64 : vector<1x2x128xf32> to vector<2x128xf32>
    %66 = vector.extract_strided_slice %65 {offsets = [0, 0], sizes = [1, 128], strides = [1, 1]} : vector<2x128xf32> to vector<1x128xf32>
    %67 = vector.broadcast %66 : vector<1x128xf32> to vector<32x128xf32>
    %68 = arith.mulf %63, %67 : vector<32x128xf32>
    %69 = vector.extract_strided_slice %65 {offsets = [1, 0], sizes = [1, 128], strides = [1, 1]} : vector<2x128xf32> to vector<1x128xf32>
    %70 = vector.broadcast %69 : vector<1x128xf32> to vector<32x128xf32>
    %71 = arith.addf %68, %70 : vector<32x128xf32>
    %cst_61 = arith.constant 0.000000e+00 : f32
    %72 = vector.broadcast %cst_61 : f32 to vector<32x128xf32>
    %73 = arith.maximumf %71, %72 : vector<32x128xf32>
    %c0_62 = arith.constant 0 : index
    %c0_63 = arith.constant 0 : index
    %74 = vector.load %arg4[%c0_62, %c0_63] : memref<64x32xbf16, #tpu.memory_space<vmem>>, vector<64x32xbf16>
    %75 = arith.truncf %73 : vector<32x128xf32> to vector<32x128xbf16>
    %cst_64 = arith.constant dense<0.000000e+00> : vector<64x128xf32>
    %76 = tpu.matmul %74, %75, %cst_64 {dimension_numbers = #tpu.dot_dimension_numbers<[1], [0], [0], [1], [0, 0, 1, 1], [], []>} : vector<64x32xbf16>, vector<32x128xbf16>, vector<64x128xf32> -> vector<64x128xf32>
    %77 = arith.truncf %76 : vector<64x128xf32> to vector<64x128xbf16>
    %c0_65 = arith.constant 0 : index
    %c0_66 = arith.constant 0 : index
    %78 = vector.load %arg5[%c0_65, %c0_66] : memref<128x256xbf16, #tpu.memory_space<vmem>>, vector<128x256xbf16>
    %cst_67 = arith.constant dense<0.000000e+00> : vector<64x256xf32>
    %79 = tpu.matmul %77, %78, %cst_67 {dimension_numbers = #tpu.dot_dimension_numbers<[1], [0], [0], [1], [0, 0, 1, 1], [], []>} : vector<64x128xbf16>, vector<128x256xbf16>, vector<64x256xf32> -> vector<64x256xf32>
    %80 = vector.shape_cast %79 : vector<64x256xf32> to vector<2x32x256xf32>
    %c0_68 = arith.constant 0 : index
    %c0_69 = arith.constant 0 : index
    %c0_70 = arith.constant 0 : index
    %81 = vector.load %arg6[%c0_68, %c0_69, %c0_70] : memref<2x32x256xf32, #tpu.memory_space<vmem>>, vector<2x32x256xf32>
    tpu.vector_store %arg6[%c0_68, %c0_69, %c0_70], %80 {strides = array<i32>} : memref<2x32x256xf32, #tpu.memory_space<vmem>>, vector<2x32x256xf32>,
    return
  }
  func.func @transform_0(%arg0: i32) -> (i32, i32, i32) {
    %c0_i32 = arith.constant 0 : i32
    %c0_i32_0 = arith.constant 0 : i32
    %c0_i32_1 = arith.constant 0 : i32
    return %arg0, %c0_i32, %c0_i32_0 : i32, i32, i32
  }
  func.func @transform_1(%arg0: i32) -> (i32, i32, i32) {
    %c0_i32 = arith.constant 0 : i32
    %c0_i32_0 = arith.constant 0 : i32
    %c0_i32_1 = arith.constant 0 : i32
    %c0_i32_2 = arith.constant 0 : i32
    return %c0_i32, %c0_i32_0, %c0_i32_1 : i32, i32, i32
  }
  func.func @transform_2(%arg0: i32) -> (i32, i32, i32) {
    %c0_i32 = arith.constant 0 : i32
    %c0_i32_0 = arith.constant 0 : i32
    %c0_i32_1 = arith.constant 0 : i32
    %c0_i32_2 = arith.constant 0 : i32
    return %c0_i32, %c0_i32_0, %c0_i32_1 : i32, i32, i32
  }
  func.func @transform_3(%arg0: i32) -> (i32, i32) {
    %c0_i32 = arith.constant 0 : i32
    %c0_i32_0 = arith.constant 0 : i32
    %c0_i32_1 = arith.constant 0 : i32
    return %c0_i32, %c0_i32_0 : i32, i32
  }
  func.func @transform_4(%arg0: i32) -> (i32, i32) {
    %c0_i32 = arith.constant 0 : i32
    %c0_i32_0 = arith.constant 0 : i32
    %c0_i32_1 = arith.constant 0 : i32
    return %c0_i32, %c0_i32_0 : i32, i32
  }
  func.func @transform_5(%arg0: i32) -> (i32, i32, i32) {
    %c0_i32 = arith.constant 0 : i32
    %c0_i32_0 = arith.constant 0 : i32
    %c0_i32_1 = arith.constant 0 : i32
    return %arg0, %c0_i32, %c0_i32_0 : i32, i32, i32
  }
}

</mosaic_0001>

<bundles_post_ra>
// kernel: _lambda_.1
= control target key start
LH: loop header
LB: loop body
LE: loop exit
PB: predicated region body
PF: predicated region fallthrough
CT: control target
= control target key end

     0   :  { %10 = vsyncpa [#allocation4], 0  ;;  %s1869_s0 = inlined_call_operand.hbm [shape: f32[2,16,64], index: 0, kind: input, shape index: {}]   ;;  %s1870_s1 = inlined_call_operand.hbm [shape: bf16[3,384,128], index: 1, kind: input, shape index: {}]   ;;  %s1871_s2 = inlined_call_operand.hbm [shape: f32[3,2,128], index: 2, kind: input, shape index: {}]   ;;  %s1872_s3 = inlined_call_operand.hbm [shape: bf16[64,32], index: 3, kind: input, shape index: {}]   ;;  %s1873_s4 = inlined_call_operand.hbm [shape: bf16[128,256], index: 4, kind: input, shape index: {}]   ;;  %s1874_s5 = inlined_call_operand.hbm [shape: f32[2,32,256], index: 5, kind: output, shape index: {}]  }
   0x1   :  { %11 = vsyncpa [#allocation7], 0 }
   0x2   :  { %12 = vsyncpa [#allocation10], 0 }
   0x3   :  { %13 = vsyncpa [#allocation5], 0  ;;  %s1759_s18 = smov [#allocation6]  }
   0x4   :  { %s31_s19 = sshll.u32 %s1759_s18, 4  ;;  %s32_s19 = int_to_ptr.vmem [resolvable:$true] %s31_s19 }
   0x5   :  { %s1639_s20 = scalar_lea.vmem %s32_s19, 9216  ;;  %p1644_p1 = scmp.lt.s32.totalorder %s32_s19, %s32_s19 }
   0x6   :  { %p1640_p0 = scmp.ne.s32.totalorder %s32_s19, %s1639_s20  ;;  %p1645_p2 = scmp.lt.s32.totalorder %s1639_s20, %s1639_s20 }
   0x8   :  { %p1646_p3 = por %p1645_p2, %p1644_p1 }
   0xa   :  { %p1647_p4 = pnand %p1646_p3, %p1640_p0 }
   0xc   :  { %1650 = shalt.err (!%p1647_p4)
}
   0xd   :  { %s1760_s21 = smov 64   ;;  %s1761_s22 = smov 4  }
   0xe   :  { %37 = dma.hbm_to_vmem [thread:$0]  %s1870_s1, 9216, %s32_s19, [#allocation7], %s1760_s21, %s1760_s21, %s1761_s22  }
   0xf   :  { %s1762_s25 = smov [#allocation9]   ;;  %s1763_s27 = smov [#allocation3]  }
  0x10   :  { %s55_s26 = sshll.u32 %s1762_s25, 4  ;;  %s19_s28 = sshll.u32 %s1763_s27, 4  ;;  %s56_s26 = int_to_ptr.vmem [resolvable:$true] %s55_s26  ;;  %s20_s28 = int_to_ptr.vmem [resolvable:$true] %s19_s28 }
  0x11   :  { %s1659_s29 = scalar_lea.vmem %s56_s26, 512  ;;  %p1664_p6 = scmp.lt.s32.totalorder %s56_s26, %s56_s26 }
  0x12   :  { %p1660_p5 = scmp.ne.s32.totalorder %s56_s26, %s1659_s29  ;;  %p1665_p7 = scmp.lt.s32.totalorder %s1659_s29, %s1659_s29 }
  0x14   :  { %p1666_p8 = por %p1665_p7, %p1664_p6 }
  0x16   :  { %p1667_p9 = pnand %p1666_p8, %p1660_p5 }
  0x18   :  { %1670 = shalt.err (!%p1667_p9)
}
  0x19   :  { %61 = dma.hbm_to_vmem [thread:$0]  %s1872_s3, 512, %s56_s26, [#allocation10], %s1760_s21, %s1760_s21, %s1761_s22  }
  0x1a   :  { %s1679_s1 = scalar_lea.vmem %s20_s28, 512  ;;  %p1684_p11 = scmp.lt.s32.totalorder %s20_s28, %s20_s28 }
  0x1b   :  { %p1680_p10 = scmp.ne.s32.totalorder %s20_s28, %s1679_s1  ;;  %p1685_p12 = scmp.lt.s32.totalorder %s1679_s1, %s1679_s1 }
  0x1d   :  { %p1686_p13 = por %p1685_p12, %p1684_p11 }
  0x1f   :  { %p1687_p0 = pnand %p1686_p13, %p1680_p10 }
  0x21   :  { %1690 = shalt.err (!%p1687_p0)
}
  0x22   :  { %s1764_s7 = smov 128   ;;  %s1765_s8 = smov 8  }
  0x23   :  { %25 = dma.hbm_to_vmem [thread:$0]  %s1869_s0, 512, %s20_s28, [#allocation4], %s1764_s7, %s1764_s7, %s1765_s8  }
  0x24   :  { %s1766_s11 = smov [#allocation8]  }
  0x25   :  { %s43_s12 = sshll.u32 %s1766_s11, 4  ;;  %s44_s12 = int_to_ptr.vmem [resolvable:$true] %s43_s12 }
  0x26   :  { %s1699_s13 = scalar_lea.vmem %s44_s12, 96  ;;  %p1704_p2 = scmp.lt.s32.totalorder %s44_s12, %s44_s12 }
  0x27   :  { %p1700_p1 = scmp.ne.s32.totalorder %s44_s12, %s1699_s13  ;;  %p1705_p3 = scmp.lt.s32.totalorder %s1699_s13, %s1699_s13 }
  0x29   :  { %p1706_p4 = por %p1705_p3, %p1704_p2 }
  0x2b   :  { %p1707_p5 = pnand %p1706_p4, %p1700_p1 }
  0x2d   :  { %1710 = shalt.err (!%p1707_p5)
}
  0x2e   :  { %s1767_s3 = smov 32   ;;  %s1768_s14 = smov 2  }
  0x2f   :  { %49 = dma.hbm_to_vmem [thread:$0]  %s1871_s2, 96, %s44_s12, [#allocation7], %s1767_s3, %s1767_s3, %s1768_s14  }
  0x30   :  { %s1769_s17 = smov [#allocation11]  }
  0x31   :  { %s67_s18 = sshll.u32 %s1769_s17, 4  ;;  %s68_s18 = int_to_ptr.vmem [resolvable:$true] %s67_s18 }
  0x32   :  { %s1719_s0 = scalar_lea.vmem %s68_s18, 2048  ;;  %p1724_p7 = scmp.lt.s32.totalorder %s68_s18, %s68_s18 }
  0x33   :  { %p1720_p6 = scmp.ne.s32.totalorder %s68_s18, %s1719_s0  ;;  %p1725_p8 = scmp.lt.s32.totalorder %s1719_s0, %s1719_s0 }
  0x35   :  { %p1726_p9 = por %p1725_p8, %p1724_p7 }
  0x37   :  { %p1727_p10 = pnand %p1726_p9, %p1720_p6 }
  0x39   :  { %1730 = shalt.err (!%p1727_p10)
}
  0x3a   :  { %73 = dma.hbm_to_vmem [thread:$0]  %s1873_s4, 2048, %s68_s18, [#allocation10], %s1764_s7, %s1764_s7, %s1765_s8  }
  0x3b   :  { %1751 = dma.done.wait [#allocation4], 512  }
  0x3c   :  { %1752 = vsyncadd [#allocation4], 4294966784 }
  0x3d   :  { %1753 = dma.done.wait [#allocation7], 9312  }
  0x3e   :  { %1754 = vsyncadd [#allocation7], 4294957984 }
  0x3f   :  { %1755 = dma.done.wait [#allocation10], 2560  }
  0x40   :  { %1756 = vsyncadd [#allocation10], 4294964736  ;;  %v1770_v0 = vmov 0   ;;  %v1771_v1 = vmov 0.0   ;;  %vm98_vm0 = vcmask 523264   ;;  %v94_v2 = vld [vmem:[#allocation3] sm:$0xff]  ;;  %v291_v63 = vlaneseq }
  0x41   :  { %241 = vmatprep.subr.bf16.mxu0 %v1770_v0  ;;  %92 = vst [vmem:[#allocation2 + $0x18] sm:$0x1] %v1771_v1  ;;  %90 = vst [vmem:[#allocation2 + $0x7] sm:$0x1] %v1771_v1  ;;  %v95_v3 = vld [vmem:[#allocation3 + $0x8] sm:$0xff]  ;;  %v96_v4 = vld [vmem:[#allocation3 + $0x10] sm:$0xff] }
  0x42   :  { %91 = vst [vmem:[#allocation2 + $0x27] sm:$0x1] %v1771_v1  ;;  %93 = vst [vmem:[#allocation2 + $0x38] sm:$0x1] %v1771_v1  ;;  %v97_v5 = vld [vmem:[#allocation3 + $0x18] sm:$0xff]  ;;  %v1544_v7 = vld [vmem:[#allocation6 + $0x30] sm:$0xff]  }
  0x43   :  { %99 = vst.msk [vmem:[#allocation2 + $0x8] sm:$0xff] %vm98_vm0, %v94_v2  ;;  %100 = vst.msk [vmem:[#allocation2 + $0x10] sm:$0xff] %vm98_vm0, %v95_v3  ;;  %v1543_v6 = vld [vmem:[#allocation6 + $0x38] sm:$0xff]   ;;  %v1545_v8 = vld [vmem:[#allocation6 + $0x28] sm:$0xff]   ;;  %v292_v1 = vshrl.u32 %v291_v63, 7  ;;  %vm1011_vm1 = vcmask 261120  }
  0x44   :  { %101 = vst.msk [vmem:[#allocation2 + $0x28] sm:$0xff] %vm98_vm0, %v96_v4  ;;  %102 = vst.msk [vmem:[#allocation2 + $0x30] sm:$0xff] %vm98_vm0, %v97_v5  ;;  %242 = vmatpush1.bf16.msra.mxu0 %v1543_v6  ;;  %v1546_v15 = vld [vmem:[#allocation6 + $0x20] sm:$0xff]   ;;  %v1547_v18 = vld [vmem:[#allocation6 + $0x18] sm:$0xff]   ;;  %s1772_s2 = smov [#allocation12]  }
  0x45   :  { %243 = vmatprep.subr.bf16.mxu0 %v1770_v0  ;;  %v1548_v20 = vld [vmem:[#allocation6 + $0x10] sm:$0xff]   ;;  %v1555_v21 = vld [vmem:[#allocation6 + $0x138] sm:$0xff]   ;;  %v1549_v25 = vld [vmem:[#allocation6 + $0x8] sm:$0xff]   ;;  %v1848_v2 = vsub.s32 0, %v292_v1  ;;  %v1850_v4 = vsub.s32 1, %v292_v1  ;;  %s1283_s4 = sshll.u32 %s1772_s2, 4  ;;  %s1284_s4 = int_to_ptr.vmem [resolvable:$true] %s1283_s4 }
  0x46   :  { %v1556_v22 = vld [vmem:[#allocation6 + $0xf8] sm:$0xff]   ;;  %1383 = vmatprep.subr.bf16.mxu1 %v1555_v21  ;;  %v1557_v23 = vld [vmem:[#allocation6 + $0x130] sm:$0xff]   ;;  %v1559_v26 = vld [vmem:[#allocation6 + $0x128] sm:$0xff]   ;;  %p1736_p12 = scmp.lt.s32.totalorder %s1284_s4, %s1284_s4 }
  0x47   :  { %1384 = vmatpush3.bf16.msra.mxu1 %v1556_v22  ;;  %v1558_v24 = vld [vmem:[#allocation6 + $0xf0] sm:$0xff]   ;;  %v1560_v27 = vld [vmem:[#allocation6 + $0xe8] sm:$0xff]   ;;  %v1550_v28 = vld [vmem:[#allocation6] sm:$0xff]  }
  0x48   :  { %244 = vmatpush1.bf16.msra.mxu0 %v1544_v7  ;;  %1385 = vmatprep.subr.bf16.mxu1 %v1557_v23  ;;  %v1551_v29 = vld [vmem:[#allocation6 + $0x58] sm:$0xff]   ;;  %v1552_v30 = vld [vmem:[#allocation6 + $0x50] sm:$0xff]   ;;  %v1553_v31 = vld [vmem:[#allocation6 + $0x48] sm:$0xff]  }
  0x49   :  { %245 = vmatprep.subr.bf16.mxu0 %v1770_v0  ;;  %v1554_v32 = vld [vmem:[#allocation6 + $0x40] sm:$0xff]   ;;  %v1563_v54 = vld [vmem:[#allocation6 + $0x118] sm:$0xff]   ;;  %v1565_v56 = vld [vmem:[#allocation6 + $0x110] sm:$0xff]  }
  0x4a   :  { %v107_v9 = vld [vmem:[#allocation2 + $0x8] sm:$0xff]  ;;  %v108_v10 = vld [vmem:[#allocation2 + $0x10] sm:$0xff]  ;;  %v1561_v52 = vld [vmem:[#allocation6 + $0x120] sm:$0xff]  }
  0x4b   :  { %v109_v11 = vld [vmem:[#allocation2 + $0x28] sm:$0xff]  ;;  %v1533_v12 = vpack.i.bf16 %v108_v10, %v107_v9  ;;  %v110_v13 = vld [vmem:[#allocation2 + $0x30] sm:$0xff]  ;;  %1386 = vmatpush3.bf16.msra.mxu1 %v1558_v24  ;;  %v1562_v53 = vld [vmem:[#allocation6 + $0xe0] sm:$0xff]  }
  0x4c   :  { %v1538_v14 = vpack.i.bf16 %v110_v13, %v109_v11  ;;  %246 = vmatpush1.bf16.msra.mxu0 %v1545_v8  ;;  %v111_v16 = vld [vmem:[#allocation2 + $0x9] sm:$0xff]  ;;  %v112_v17 = vld [vmem:[#allocation2 + $0x11] sm:$0xff]  ;;  %1387 = vmatprep.subr.bf16.mxu1 %v1559_v26  ;;  %v1569_v60 = vld [vmem:[#allocation6 + $0x100] sm:$0xff]  }
  0x4d   :  { %1534 = vrot.lane.b32.xlu0 %v1533_v12, %s1760_s21  ;;  %247 = vmatprep.subr.bf16.mxu0 %v1770_v0  ;;  %v136_v19 = vpack.c.bf16 %v112_v17, %v111_v16  ;;  %v103_v33 = vld [vmem:[#allocation2 + $0x7] sm:$0xff]  ;;  %v104_v35 = vld [vmem:[#allocation2 + $0xf] sm:$0xff]  ;;  %v1564_v55 = vld [vmem:[#allocation6 + $0xd8] sm:$0xff]  }
  0x4e   :  { %v113_v36 = vld [vmem:[#allocation2 + $0x29] sm:$0xff]  ;;  %v114_v37 = vld [vmem:[#allocation2 + $0x31] sm:$0xff]  ;;  %v1570_v61 = vld [vmem:[#allocation6 + $0xc0] sm:$0xff]  }
  0x4f   :  { %1309 = vmatprep.mubr.msk.bf16.mxu0 %vm98_vm0, %v136_v19  ;;  %1388 = vmatpush3.bf16.msra.mxu1 %v1560_v27  ;;  %v138_v42 = vpack.c.bf16 %v114_v37, %v113_v36  ;;  %v105_v45 = vld [vmem:[#allocation2 + $0x27] sm:$0xff]  ;;  %v106_v46 = vld [vmem:[#allocation2 + $0x2f] sm:$0xff]  ;;  %v1571_v62 = vld [vmem:[#allocation6 + $0x178] sm:$0xff]  }
  0x50   :  { %248 = vmatpush1.bf16.msra.mxu0 %v1546_v15  ;;  %1389 = vmatprep.subr.bf16.mxu1 %v1561_v52  ;;  %v1566_v57 = vld [vmem:[#allocation6 + $0xd0] sm:$0xff]   ;;  %v1567_v58 = vld [vmem:[#allocation6 + $0x108] sm:$0xff]   ;;  %v290_v3 = vld [vmem:[#allocation8] sm:$0x3] }
  0x51   :  { %1539 = vrot.lane.b32.xlu0 %v1538_v14, %s1760_s21  ;;  %249 = vmatprep.subr.bf16.mxu0 %v1770_v0  ;;  %v1568_v59 = vld [vmem:[#allocation6 + $0xc8] sm:$0xff]   ;;  %v294_v5 = vrot.slane %v290_v3, %v1848_v2  ;;  %v302_v6 = vrot.slane %v290_v3, %v1850_v4  ;;  %v1594_v63 = vld [vmem:[#allocation6 + $0x180] sm:$0xff]   ;;  %v1595_v1 = vld [vmem:[#allocation6 + $0x238] sm:$0xff]   ;;  %s1731_s21 = scalar_lea.vmem %s1284_s4, 2048 }
  0x52   :  { %v1583_v52 = vld [vmem:[#allocation6 + $0x1e8] sm:$0xff]   ;;  %p1732_p11 = scmp.ne.s32.totalorder %s1284_s4, %s1731_s21  ;;  %p1737_p13 = scmp.lt.s32.totalorder %s1731_s21, %s1731_s21 }
  0x53   :  { %1390 = vmatpush3.bf16.msra.mxu1 %v1562_v53  ;;  %v1584_v53 = vld [vmem:[#allocation6 + $0x1a8] sm:$0xff]  }
  0x54   :  { %250 = vmatpush1.bf16.msra.mxu0 %v1547_v18  ;;  %1391 = vmatprep.subr.bf16.mxu1 %v1563_v54  ;;  %v1585_v54 = vld [vmem:[#allocation6 + $0x1e0] sm:$0xff]   ;;  %p1738_p0 = por %p1737_p13, %p1736_p12 }
  0x55   :  { %251 = vmatprep.subr.bf16.mxu0 %v1770_v0 }
  0x56   :  { %p1739_p1 = pnand %p1738_p0, %p1732_p11 }
  0x57   :  { %1392 = vmatpush3.bf16.msra.mxu1 %v1564_v55  ;;  %v1586_v55 = vld [vmem:[#allocation6 + $0x1a0] sm:$0xff]  }
  0x58   :  { %252 = vmatpush1.bf16.msra.mxu0 %v1548_v20  ;;  %1393 = vmatprep.subr.bf16.mxu1 %v1565_v56  ;;  %v1587_v56 = vld [vmem:[#allocation6 + $0x1d8] sm:$0xff]  }
  0x59   :  { %253 = vmatprep.subr.bf16.mxu0 %v1770_v0 }
  0x5b   :  { %1394 = vmatpush3.bf16.msra.mxu1 %v1566_v57  ;;  %v1588_v57 = vld [vmem:[#allocation6 + $0x198] sm:$0xff]  }
  0x5c   :  { %254 = vmatpush1.bf16.msra.mxu0 %v1549_v25  ;;  %1395 = vmatprep.subr.bf16.mxu1 %v1567_v58  ;;  %v1589_v58 = vld [vmem:[#allocation6 + $0x1d0] sm:$0xff]  }
  0x5d   :  { %255 = vmatprep.subr.bf16.mxu0 %v1770_v0 }
  0x5f   :  { %1396 = vmatpush3.bf16.msra.mxu1 %v1568_v59  ;;  %v1590_v59 = vld [vmem:[#allocation6 + $0x190] sm:$0xff]  }
  0x60   :  { %256 = vmatpush1.bf16.msra.mxu0 %v1550_v28  ;;  %1397 = vmatprep.subr.bf16.mxu1 %v1569_v60  ;;  %v1591_v60 = vld [vmem:[#allocation6 + $0x1c8] sm:$0xff]  }
  0x61   :  { %265 = vmatprep.subr.bf16.mxu0 %v1770_v0 }
  0x63   :  { %1398 = vmatpush3.bf16.msra.mxu1 %v1570_v61  ;;  %v1592_v61 = vld [vmem:[#allocation6 + $0x188] sm:$0xff]  }
  0x64   :  { %266 = vmatpush2.bf16.msra.mxu0 %v1551_v29  ;;  %1465 = vmatprep.subr.bf16.mxu1 %v1571_v62 }
  0x65   :  { %267 = vmatprep.subr.bf16.mxu0 %v1770_v0 }
  0x68   :  { %268 = vmatpush2.bf16.msra.mxu0 %v1552_v30 }
  0x69   :  { %269 = vmatprep.subr.bf16.mxu0 %v1770_v0 }
  0x6c   :  { %270 = vmatpush2.bf16.msra.mxu0 %v1553_v31  ;;  %v1572_v31 = vld [vmem:[#allocation6 + $0x170] sm:$0xff]  }
  0x6d   :  { %271 = vmatprep.subr.bf16.mxu0 %v1770_v0 }
  0x70   :  { %272 = vmatpush2.bf16.msra.mxu0 %v1554_v32 }
  0xbf   :  { %v1535_v34 = vpop.permute.xlu0 %1534 }
  0xc0   :  { %v1537_v38 = vunpack.i.h.bf16 %v1535_v34  ;;  %v1536_v39 = vunpack.i.l.bf16 %v1535_v34 }
  0xc2   :  { %v131_v40 = vsel %vm98_vm0, %v103_v33, %v1536_v39  ;;  %v132_v41 = vsel %vm98_vm0, %v104_v35, %v1537_v38  ;;  %v1573_v33 = vld [vmem:[#allocation6 + $0x168] sm:$0xff]   ;;  %v1574_v39 = vld [vmem:[#allocation6 + $0x160] sm:$0xff]  }
  0xc3   :  { %v135_v43 = vpack.c.bf16 %v132_v41, %v131_v40  ;;  %v1540_v44 = vpop.permute.xlu0 %1539  ;;  %v1575_v41 = vld [vmem:[#allocation6 + $0x158] sm:$0xff]  }
  0xc4   :  { %v1542_v47 = vunpack.i.h.bf16 %v1540_v44  ;;  %v1541_v48 = vunpack.i.l.bf16 %v1540_v44  ;;  %v1578_v44 = vld [vmem:[#allocation6 + $0x140] sm:$0xff]  }
  0xc5   :  { %274 = vmatmul.mubr.bf16.vlgmr.msra.gmra.mxu0 %v135_v43  ;;  %v1577_v43 = vld [vmem:[#allocation6 + $0x148] sm:$0xff]  }
  0xc6   :  { %1310 = vmatprep.mubr.msk.bf16.mxu0 %vm98_vm0, %v138_v42  ;;  %v133_v49 = vsel %vm98_vm0, %v105_v45, %v1541_v48  ;;  %v134_v50 = vsel %vm98_vm0, %v106_v46, %v1542_v47  ;;  %v1576_v42 = vld [vmem:[#allocation6 + $0x150] sm:$0xff]   ;;  %v1579_v48 = vld [vmem:[#allocation6 + $0x1f8] sm:$0xff]  }
  0xc7   :  { %v137_v51 = vpack.c.bf16 %v134_v50, %v133_v49  ;;  %v1580_v49 = vld [vmem:[#allocation6 + $0x1b8] sm:$0xff]   ;;  %v1581_v50 = vld [vmem:[#allocation6 + $0x1f0] sm:$0xff]  }
  0xcd   :  { %282 = vmatmul.mubr.bf16.gmra.mxu0 %v137_v51  ;;  %v1582_v51 = vld [vmem:[#allocation6 + $0x1b0] sm:$0xff]  }
 0x185   :  { %v275_v7 = vpop.f32.mrf.mxu0 }
 0x186   :  { %v295_v8 = vmul.f32 %v294_v5, %v275_v7 }
 0x187   :  { %v277_v9 = vpop.f32.mrf.mxu0 }
 0x188   :  { %v303_v10 = vadd.f32 %v302_v6, %v295_v8 }
 0x189   :  { %v278_v11 = vpop.f32.mrf.mxu0 }
 0x18a   :  { %v307_v12 = vmax.f32 %v303_v10, 0.0  ;;  %v296_v13 = vmul.f32 %v294_v5, %v278_v11  ;;  %v625_v11 = vld [vmem:[#allocation8 + $0x2] sm:$0x3] }
 0x18b   :  { %v280_v14 = vpop.f32.mrf.mxu0 }
 0x18c   :  { %311 = vst [vmem:[#allocation2 + $0x8] sm:$0xff] %v307_v12  ;;  %v304_v15 = vadd.f32 %v302_v6, %v296_v13  ;;  %v629_v14 = vrot.slane %v625_v11, %v1848_v2 }
 0x18d   :  { %v283_v16 = vpop.f32.mrf.mxu0 }
 0x18e   :  { %v308_v17 = vmax.f32 %v304_v15, 0.0  ;;  %v297_v18 = vmul.f32 %v294_v5, %v283_v16 }
 0x18f   :  { %v285_v19 = vpop.f32.mrf.mxu0 }
 0x190   :  { %312 = vst [vmem:[#allocation2 + $0x10] sm:$0xff] %v308_v17  ;;  %v305_v20 = vadd.f32 %v302_v6, %v297_v18  ;;  %v328_v21 = vpack.c.bf16 %v308_v17, %v307_v12  ;;  %v637_v18 = vrot.slane %v625_v11, %v1850_v4 }
 0x191   :  { %v286_v22 = vpop.f32.mrf.mxu0 }
 0x192   :  { %v309_v23 = vmax.f32 %v305_v20, 0.0  ;;  %v298_v24 = vmul.f32 %v294_v5, %v286_v22  ;;  %558 = vmatprep.mubr.bf16.mxu1 %v328_v21 }
 0x193   :  { %v288_v25 = vpop.f32.mrf.mxu0  ;;  %v315_v28 = vld [vmem:[#allocation2 + $0x7] sm:$0xff] }
 0x194   :  { %313 = vst [vmem:[#allocation2 + $0x28] sm:$0xff] %v309_v23  ;;  %v306_v26 = vadd.f32 %v302_v6, %v298_v24 }
 0x196   :  { %v310_v27 = vmax.f32 %v306_v26, 0.0 }
 0x197   :  { %v316_v29 = vld [vmem:[#allocation2 + $0xf] sm:$0xff] }
 0x198   :  { %314 = vst [vmem:[#allocation2 + $0x30] sm:$0xff] %v310_v27  ;;  %v327_v30 = vpack.c.bf16 %v316_v29, %v315_v28  ;;  %v331_v32 = vpack.c.bf16 %v310_v27, %v309_v23  ;;  %v323_v35 = vld [vmem:[#allocation2 + $0x9] sm:$0xff]  ;;  %v324_v36 = vld [vmem:[#allocation2 + $0x11] sm:$0xff] }
 0x199   :  { %v329_v40 = vpack.c.bf16 %v324_v36, %v323_v35 }
 0x19a   :  { %559 = vmatmul.mubr.bf16.vlgmr.msra.gmra.mxu1 %v327_v30 }
 0x19b   :  { %1466 = vmatpush3.bf16.msra.mxu1 %v1571_v62  ;;  %566 = vmatprep.mubr.bf16.mxu1 %v331_v32  ;;  %v317_v34 = vld [vmem:[#allocation2 + $0x27] sm:$0xff] }
 0x19c   :  { %1467 = vmatprep.subr.bf16.mxu1 %v1572_v31  ;;  %v1593_v62 = vld [vmem:[#allocation6 + $0x1c0] sm:$0xff]  }
 0x19f   :  { %1468 = vmatpush3.bf16.msra.mxu1 %v1572_v31  ;;  %v318_v37 = vld [vmem:[#allocation2 + $0x2f] sm:$0xff] }
 0x1a0   :  { %1469 = vmatprep.subr.bf16.mxu1 %v1573_v33  ;;  %v330_v38 = vpack.c.bf16 %v318_v37, %v317_v34  ;;  %v325_v45 = vld [vmem:[#allocation2 + $0x29] sm:$0xff]  ;;  %v326_v46 = vld [vmem:[#allocation2 + $0x31] sm:$0xff] }
 0x1a1   :  { %v332_v47 = vpack.c.bf16 %v326_v46, %v325_v45  ;;  %v1597_v45 = vld [vmem:[#allocation6 + $0x228] sm:$0xff]  }
 0x1a2   :  { %567 = vmatmul.mubr.bf16.gmra.mxu1 %v330_v38 }
 0x1a3   :  { %1470 = vmatpush3.bf16.msra.mxu1 %v1573_v33  ;;  %1481 = vmatprep.mubr.bf16.mxu1 %v329_v40 }
 0x1a4   :  { %1471 = vmatprep.subr.bf16.mxu1 %v1574_v39 }
 0x1a7   :  { %1472 = vmatpush3.bf16.msra.mxu1 %v1574_v39 }
 0x1a8   :  { %1473 = vmatprep.subr.bf16.mxu1 %v1575_v41 }
 0x1ab   :  { %1474 = vmatpush3.bf16.msra.mxu1 %v1575_v41 }
 0x1ac   :  { %1475 = vmatprep.subr.bf16.mxu1 %v1576_v42 }
 0x1af   :  { %1476 = vmatpush3.bf16.msra.mxu1 %v1576_v42 }
 0x1b0   :  { %1477 = vmatprep.subr.bf16.mxu1 %v1577_v43 }
 0x1b3   :  { %1478 = vmatpush3.bf16.msra.mxu1 %v1577_v43  ;;  %v1596_v43 = vld [vmem:[#allocation6 + $0x230] sm:$0xff]  }
 0x1b4   :  { %1479 = vmatprep.subr.bf16.mxu1 %v1578_v44 }
 0x1b7   :  { %1480 = vmatpush3.bf16.msra.mxu1 %v1578_v44 }
 0x1b8   :  { %1421 = vmatprep.subr.bf16.mxu1 %v1579_v48 }
 0x1ba   :  { %1482 = vmatmul.mubr.bf16.vlgmr.msra.gmra.mxu1 %v332_v47 }
 0x1bb   :  { %1422 = vmatpush3.bf16.msra.mxu1 %v1580_v49 }
 0x1bc   :  { %1423 = vmatprep.subr.bf16.mxu1 %v1581_v50 }
 0x1bf   :  { %1424 = vmatpush3.bf16.msra.mxu1 %v1582_v51  ;;  %v1598_v51 = vld [vmem:[#allocation6 + $0x220] sm:$0xff]  }
 0x1c0   :  { %1425 = vmatprep.subr.bf16.mxu1 %v1583_v52 }
 0x1c3   :  { %1426 = vmatpush3.bf16.msra.mxu1 %v1584_v53  ;;  %v1599_v53 = vld [vmem:[#allocation6 + $0x218] sm:$0xff]  }
 0x1c4   :  { %1427 = vmatprep.subr.bf16.mxu1 %v1585_v54  ;;  %v1600_v54 = vld [vmem:[#allocation6 + $0x210] sm:$0xff]  }
 0x1c7   :  { %1428 = vmatpush3.bf16.msra.mxu1 %v1586_v55  ;;  %v1601_v55 = vld [vmem:[#allocation6 + $0x208] sm:$0xff]  }
 0x1c8   :  { %1429 = vmatprep.subr.bf16.mxu1 %v1587_v56  ;;  %v1602_v56 = vld [vmem:[#allocation6 + $0x200] sm:$0xff]  }
 0x1cb   :  { %1430 = vmatpush3.bf16.msra.mxu1 %v1588_v57 }
 0x1cc   :  { %1431 = vmatprep.subr.bf16.mxu1 %v1589_v58 }
 0x1cf   :  { %1432 = vmatpush3.bf16.msra.mxu1 %v1590_v59 }
 0x1d0   :  { %1433 = vmatprep.subr.bf16.mxu1 %v1591_v60  ;;  %v1603_v60 = vld [vmem:[#allocation9] sm:$0xff]  }
 0x1d1   :  { %1509 = vmatprep.mubr.msk.bf16.mxu0 %vm1011_vm1, %v1603_v60 }
 0x1d3   :  { %1434 = vmatpush3.bf16.msra.mxu1 %v1592_v61 }
 0x1d4   :  { %1435 = vmatprep.subr.bf16.mxu1 %v1593_v62 }
 0x1d7   :  { %1436 = vmatpush3.bf16.msra.mxu1 %v1594_v63 }
 0x1d8   :  { %1485 = vmatprep.subr.bf16.mxu1 %v1595_v1 }
 0x25a   :  { %v1399_v3 = vpop.f32.mrf.mxu1 }
 0x25c   :  { %v1400_v5 = vpop.f32.mrf.mxu1 }
 0x25d   :  { %v1401_v16 = vadd.f32 %v1400_v5, %v1399_v3 }
 0x25e   :  { %v1402_v6 = vpop.f32.mrf.mxu1 }
 0x260   :  { %v1403_v7 = vpop.f32.mrf.mxu1 }
 0x261   :  { %v1404_v24 = vadd.f32 %v1403_v7, %v1402_v6  ;;  %v960_v7 = vld [vmem:[#allocation8 + $0x4] sm:$0x3] }
 0x262   :  { %v1405_v8 = vpop.f32.mrf.mxu1 }
 0x264   :  { %v1406_v9 = vpop.f32.mrf.mxu1 }
 0x265   :  { %v1407_v13 = vadd.f32 %v1406_v9, %v1405_v8 }
 0x266   :  { %v1408_v10 = vpop.f32.mrf.mxu1 }
 0x268   :  { %v1409_v12 = vpop.f32.mrf.mxu1 }
 0x269   :  { %v1410_v20 = vadd.f32 %v1409_v12, %v1408_v10  ;;  %v964_v10 = vrot.slane %v960_v7, %v1848_v2 }
 0x27a   :  { %v1483_v15 = vpop.f32.mrf.mxu1 }
 0x27b   :  { %v618_v17 = vadd.f32 %v1483_v15, %v1407_v13 }
 0x27c   :  { %v609_v19 = vpop.f32.mrf.mxu1 }
 0x27d   :  { %v632_v21 = vmul.f32 %v629_v14, %v618_v17  ;;  %v610_v22 = vadd.f32 %v1401_v16, %v609_v19  ;;  %v972_v17 = vrot.slane %v960_v7, %v1850_v4 }
 0x27e   :  { %v1484_v23 = vpop.f32.mrf.mxu1 }
 0x27f   :  { %v640_v25 = vadd.f32 %v637_v18, %v632_v21  ;;  %v630_v26 = vmul.f32 %v629_v14, %v610_v22  ;;  %v621_v27 = vadd.f32 %v1484_v23, %v1410_v20 }
 0x280   :  { %v612_v28 = vpop.f32.mrf.mxu1 }
 0x281   :  { %v644_v29 = vmax.f32 %v640_v25, 0.0  ;;  %v638_v30 = vadd.f32 %v637_v18, %v630_v26  ;;  %v633_v31 = vmul.f32 %v629_v14, %v621_v27  ;;  %v613_v32 = vadd.f32 %v1404_v24, %v612_v28 }
 0x283   :  { %648 = vst [vmem:[#allocation2 + $0x28] sm:$0xff] %v644_v29  ;;  %v642_v33 = vmax.f32 %v638_v30, 0.0  ;;  %v641_v34 = vadd.f32 %v637_v18, %v633_v31  ;;  %v631_v35 = vmul.f32 %v629_v14, %v613_v32 }
 0x285   :  { %646 = vst [vmem:[#allocation2 + $0x8] sm:$0xff] %v642_v33  ;;  %v645_v36 = vmax.f32 %v641_v34, 0.0  ;;  %v639_v37 = vadd.f32 %v637_v18, %v631_v35  ;;  %v1609_v35 = vld [vmem:[#allocation11 + $0x74] ss:$8 sps:$4 sm:$0xff]  }
 0x287   :  { %649 = vst [vmem:[#allocation2 + $0x30] sm:$0xff] %v645_v36  ;;  %v643_v38 = vmax.f32 %v639_v37, 0.0  ;;  %v666_v44 = vpack.c.bf16 %v645_v36, %v644_v29  ;;  %v1604_v36 = vld [vmem:[#allocation9 + $0x8] sm:$0xff]   ;;  %v1605_v37 = vld [vmem:[#allocation9 + $0x10] sm:$0xff]  }
 0x289   :  { %647 = vst [vmem:[#allocation2 + $0x10] sm:$0xff] %v643_v38  ;;  %v663_v39 = vpack.c.bf16 %v643_v38, %v642_v33  ;;  %v1607_v38 = vld [vmem:[#allocation11 + $0x70] ss:$8 sps:$4 sm:$0xff]  }
 0x28a   :  { %v652_v49 = vld [vmem:[#allocation2 + $0x27] sm:$0xff] }
 0x28b   :  { %893 = vmatprep.mubr.bf16.mxu1 %v663_v39  ;;  %v1612_v39 = vld [vmem:[#allocation11 + $0x64] ss:$8 sps:$4 sm:$0xff]  }
 0x28c   :  { %v650_v40 = vld [vmem:[#allocation2 + $0x7] sm:$0xff] }
 0x28e   :  { %v653_v46 = vld [vmem:[#allocation2 + $0x2f] sm:$0xff] }
 0x28f   :  { %v665_v50 = vpack.c.bf16 %v653_v46, %v652_v49  ;;  %v660_v57 = vld [vmem:[#allocation2 + $0x29] sm:$0xff]  ;;  %v661_v58 = vld [vmem:[#allocation2 + $0x31] sm:$0xff]  ;;  %v1621_v46 = vld [vmem:[#allocation11 + $0x34] ss:$8 sps:$4 sm:$0xff]  }
 0x290   :  { %v651_v41 = vld [vmem:[#allocation2 + $0xf] sm:$0xff]  ;;  %v667_v59 = vpack.c.bf16 %v661_v58, %v660_v57 }
 0x291   :  { %v662_v42 = vpack.c.bf16 %v651_v41, %v650_v40  ;;  %v658_v47 = vld [vmem:[#allocation2 + $0x9] sm:$0xff]  ;;  %v659_v48 = vld [vmem:[#allocation2 + $0x11] sm:$0xff]  ;;  %v1615_v41 = vld [vmem:[#allocation11 + $0x54] ss:$8 sps:$4 sm:$0xff]  }
 0x292   :  { %v664_v52 = vpack.c.bf16 %v659_v48, %v658_v47  ;;  %v1610_v40 = vld [vmem:[#allocation11 + $0x60] ss:$8 sps:$4 sm:$0xff]   ;;  %v1619_v47 = vld [vmem:[#allocation11 + $0x30] ss:$8 sps:$4 sm:$0xff]   ;;  %v1624_v48 = vld [vmem:[#allocation11 + $0x24] ss:$8 sps:$4 sm:$0xff]  }
 0x293   :  { %894 = vmatmul.mubr.bf16.vlgmr.msra.gmra.mxu1 %v662_v42  ;;  %v1606_v42 = vld [vmem:[#allocation9 + $0x18] sm:$0xff]   ;;  %v1622_v49 = vld [vmem:[#allocation11 + $0x20] ss:$8 sps:$4 sm:$0xff]  }
 0x294   :  { %1486 = vmatpush3.bf16.msra.mxu1 %v1595_v1  ;;  %901 = vmatprep.mubr.bf16.mxu1 %v666_v44  ;;  %v1618_v44 = vld [vmem:[#allocation11 + $0x44] ss:$8 sps:$4 sm:$0xff]  }
 0x295   :  { %1487 = vmatprep.subr.bf16.mxu1 %v1596_v43 }
 0x298   :  { %1488 = vmatpush3.bf16.msra.mxu1 %v1596_v43  ;;  %v1613_v43 = vld [vmem:[#allocation11 + $0x50] ss:$8 sps:$4 sm:$0xff]  }
 0x299   :  { %1489 = vmatprep.subr.bf16.mxu1 %v1597_v45 }
 0x29b   :  { %902 = vmatmul.mubr.bf16.gmra.mxu1 %v665_v50  ;;  %v1627_v50 = vld [vmem:[#allocation11 + $0x14] ss:$8 sps:$4 sm:$0xff]  }
 0x29c   :  { %1490 = vmatpush3.bf16.msra.mxu1 %v1597_v45  ;;  %1501 = vmatprep.mubr.bf16.mxu1 %v664_v52  ;;  %v1616_v45 = vld [vmem:[#allocation11 + $0x40] ss:$8 sps:$4 sm:$0xff]   ;;  %v1630_v52 = vld [vmem:[#allocation11 + $0x4] ss:$8 sps:$4 sm:$0xff]  }
 0x29d   :  { %1491 = vmatprep.subr.bf16.mxu1 %v1598_v51 }
 0x2a0   :  { %1492 = vmatpush3.bf16.msra.mxu1 %v1598_v51  ;;  %v1625_v51 = vld [vmem:[#allocation11 + $0x10] ss:$8 sps:$4 sm:$0xff]  }
 0x2a1   :  { %1493 = vmatprep.subr.bf16.mxu1 %v1599_v53 }
 0x2a4   :  { %1494 = vmatpush3.bf16.msra.mxu1 %v1599_v53  ;;  %v1628_v53 = vld [vmem:[#allocation11] ss:$8 sps:$4 sm:$0xff]  }
 0x2a5   :  { %1495 = vmatprep.subr.bf16.mxu1 %v1600_v54 }
 0x2a8   :  { %1496 = vmatpush3.bf16.msra.mxu1 %v1600_v54 }
 0x2a9   :  { %1497 = vmatprep.subr.bf16.mxu1 %v1601_v55 }
 0x2ac   :  { %1498 = vmatpush3.bf16.msra.mxu1 %v1601_v55 }
 0x2ad   :  { %1499 = vmatprep.subr.bf16.mxu1 %v1602_v56 }
 0x2b0   :  { %1500 = vmatpush3.bf16.msra.mxu1 %v1602_v56 }
 0x2b3   :  { %1502 = vmatmul.mubr.bf16.vlgmr.msra.gmra.mxu1 %v667_v59 }
 0x353   :  { %v1437_v61 = vpop.f32.mrf.mxu1 }
 0x355   :  { %v1438_v62 = vpop.f32.mrf.mxu1 }
 0x356   :  { %v1439_v12 = vadd.f32 %v1438_v62, %v1437_v61 }
 0x357   :  { %v1440_v63 = vpop.f32.mrf.mxu1 }
 0x359   :  { %v1441_v1 = vpop.f32.mrf.mxu1 }
 0x35a   :  { %v1442_v20 = vadd.f32 %v1441_v1, %v1440_v63 }
 0x35b   :  { %v1443_v3 = vpop.f32.mrf.mxu1 }
 0x35d   :  { %v1444_v5 = vpop.f32.mrf.mxu1 }
 0x35e   :  { %v1445_v9 = vadd.f32 %v1444_v5, %v1443_v3 }
 0x35f   :  { %v1446_v6 = vpop.f32.mrf.mxu1 }
 0x361   :  { %v1447_v8 = vpop.f32.mrf.mxu1 }
 0x362   :  { %v1448_v15 = vadd.f32 %v1447_v8, %v1446_v6 }
 0x373   :  { %v1503_v11 = vpop.f32.mrf.mxu1 }
 0x374   :  { %v953_v13 = vadd.f32 %v1503_v11, %v1445_v9 }
 0x375   :  { %v944_v14 = vpop.f32.mrf.mxu1 }
 0x376   :  { %v967_v16 = vmul.f32 %v964_v10, %v953_v13  ;;  %v945_v18 = vadd.f32 %v1439_v12, %v944_v14 }
 0x377   :  { %v1504_v19 = vpop.f32.mrf.mxu1 }
 0x378   :  { %v965_v21 = vmul.f32 %v964_v10, %v945_v18  ;;  %v956_v22 = vadd.f32 %v1504_v19, %v1448_v15  ;;  %v975_v24 = vadd.f32 %v972_v17, %v967_v16 }
 0x379   :  { %v947_v23 = vpop.f32.mrf.mxu1 }
 0x37a   :  { %v968_v25 = vmul.f32 %v964_v10, %v956_v22  ;;  %v948_v26 = vadd.f32 %v1442_v20, %v947_v23  ;;  %v973_v27 = vadd.f32 %v972_v17, %v965_v21  ;;  %v979_v29 = vmax.f32 %v975_v24, 0.0 }
 0x37c   :  { %v976_v28 = vadd.f32 %v972_v17, %v968_v25  ;;  %v966_v2 = vmul.f32 %v964_v10, %v948_v26  ;;  %v977_v32 = vmax.f32 %v973_v27, 0.0 }
 0x37e   :  { %v980_v30 = vmax.f32 %v976_v28, 0.0  ;;  %v974_v31 = vadd.f32 %v972_v17, %v966_v2 }
 0x380   :  { %v978_v33 = vmax.f32 %v974_v31, 0.0  ;;  %v990_v34 = vpack.c.bf16 %v980_v30, %v979_v29 }
 0x382   :  { %1505 = vmatprep.subr.bf16.mxu0 %v990_v34  ;;  %v989_v4 = vpack.c.bf16 %v978_v33, %v977_v32 }
 0x383   :  { %1506 = vmatpush3.bf16.msra.mxu0 %v990_v34 }
 0x384   :  { %1507 = vmatprep.subr.bf16.mxu0 %v989_v4 }
 0x387   :  { %1508 = vmatpush3.bf16.msra.mxu0 %v989_v4 }
 0x388   :  { %1189 = vmatprep.subr.bf16.mxu0 %v1609_v35 }
 0x38a   :  { %1510 = vmatmul.mubr.msk.bf16.vlgmr.msra.gmra.mxu0 %vm1011_vm1, %v1604_v36 }
 0x38b   :  { %1513 = vmatprep.mubr.msk.bf16.mxu0 %vm1011_vm1, %v1605_v37  ;;  %1190 = vmatpush1.bf16.msra.mxu0 %v1607_v38 }
 0x38c   :  { %1191 = vmatprep.subr.bf16.mxu0 %v1612_v39 }
 0x38f   :  { %1192 = vmatpush1.bf16.msra.mxu0 %v1610_v40 }
 0x390   :  { %1193 = vmatprep.subr.bf16.mxu0 %v1615_v41 }
 0x392   :  { %1514 = vmatmul.mubr.msk.bf16.gmra.mxu0 %vm1011_vm1, %v1606_v42 }
 0x393   :  { %1194 = vmatpush1.bf16.msra.mxu0 %v1613_v43  ;;  %1221 = vmatprep.mubr.bf16.mxu0 %v1770_v0 }
 0x394   :  { %1195 = vmatprep.subr.bf16.mxu0 %v1618_v44 }
 0x397   :  { %1196 = vmatpush1.bf16.msra.mxu0 %v1616_v45 }
 0x398   :  { %1197 = vmatprep.subr.bf16.mxu0 %v1621_v46 }
 0x39b   :  { %1198 = vmatpush1.bf16.msra.mxu0 %v1619_v47 }
 0x39c   :  { %1199 = vmatprep.subr.bf16.mxu0 %v1624_v48 }
 0x39f   :  { %1200 = vmatpush1.bf16.msra.mxu0 %v1622_v49 }
 0x3a0   :  { %1201 = vmatprep.subr.bf16.mxu0 %v1627_v50 }
 0x3a3   :  { %1202 = vmatpush1.bf16.msra.mxu0 %v1625_v51 }
 0x3a4   :  { %1203 = vmatprep.subr.bf16.mxu0 %v1630_v52 }
 0x3a7   :  { %1204 = vmatpush1.bf16.msra.mxu0 %v1628_v53 }
 0x44a   :  { %v1511_v54 = vpop.f32.mrf.mxu0 }
 0x44c   :  { %v1058_v55 = vpop.f32.mrf.mxu0 }
 0x44e   :  { %v1512_v56 = vpop.f32.mrf.mxu0 }
 0x44f   :  { %v1090_v61 = vpack.c.bf16 %v1512_v56, %v1511_v54 }
 0x450   :  { %v1061_v57 = vpop.f32.mrf.mxu0 }
 0x451   :  { %v1089_v58 = vpack.c.bf16 %v1061_v57, %v1058_v55 }
 0x452   :  { %v1515_v59 = vpop.f32.mrf.mxu0 }
 0x453   :  { %1222 = vmatmul.mubr.bf16.vlgmr.msra.gmra.mxu0 %v1089_v58 }
 0x454   :  { %1231 = vmatprep.mubr.bf16.mxu0 %v1770_v0  ;;  %v1074_v60 = vpop.f32.mrf.mxu0 }
 0x456   :  { %v1516_v62 = vpop.f32.mrf.mxu0 }
 0x457   :  { %v1092_v3 = vpack.c.bf16 %v1516_v62, %v1515_v59 }
 0x458   :  { %v1077_v63 = vpop.f32.mrf.mxu0 }
 0x459   :  { %v1091_v1 = vpack.c.bf16 %v1077_v63, %v1074_v60 }
 0x45b   :  { %1232 = vmatmul.mubr.bf16.gmra.mxu0 %v1090_v61 }
 0x45c   :  { %1241 = vmatprep.mubr.bf16.mxu0 %v1770_v0 }
 0x463   :  { %1242 = vmatmul.mubr.bf16.gmra.mxu0 %v1091_v1 }
 0x464   :  { %1251 = vmatprep.mubr.bf16.mxu0 %v1770_v0 }
 0x46b   :  { %1252 = vmatmul.mubr.bf16.gmra.mxu0 %v1092_v3 }
 0x513   :  { %v1223_v5 = vpop.f32.mrf.mxu0 }
 0x514   :  { %1262 = vst [vmem:[#allocation12] sm:$0xff] %v1223_v5 }
 0x515   :  { %v1225_v6 = vpop.f32.mrf.mxu0 }
 0x516   :  { %1263 = vst [vmem:[#allocation12 + $0x8] sm:$0xff] %v1225_v6 }
 0x517   :  { %v1227_v7 = vpop.f32.mrf.mxu0 }
 0x518   :  { %1264 = vst [vmem:[#allocation12 + $0x10] sm:$0xff] %v1227_v7 }
 0x519   :  { %v1229_v8 = vpop.f32.mrf.mxu0 }
 0x51a   :  { %1265 = vst [vmem:[#allocation12 + $0x18] sm:$0xff] %v1229_v8 }
 0x51b   :  { %v1233_v9 = vpop.f32.mrf.mxu0 }
 0x51c   :  { %1266 = vst [vmem:[#allocation12 + $0x20] sm:$0xff] %v1233_v9 }
 0x51d   :  { %v1235_v10 = vpop.f32.mrf.mxu0 }
 0x51e   :  { %1267 = vst [vmem:[#allocation12 + $0x28] sm:$0xff] %v1235_v10 }
 0x51f   :  { %v1237_v11 = vpop.f32.mrf.mxu0 }
 0x520   :  { %1268 = vst [vmem:[#allocation12 + $0x30] sm:$0xff] %v1237_v11 }
 0x521   :  { %v1239_v12 = vpop.f32.mrf.mxu0 }
 0x522   :  { %1269 = vst [vmem:[#allocation12 + $0x38] sm:$0xff] %v1239_v12 }
 0x523   :  { %v1243_v13 = vpop.f32.mrf.mxu0 }
 0x524   :  { %1270 = vst [vmem:[#allocation12 + $0x40] sm:$0xff] %v1243_v13 }
 0x525   :  { %v1245_v0 = vpop.f32.mrf.mxu0 }
 0x526   :  { %1271 = vst [vmem:[#allocation12 + $0x48] sm:$0xff] %v1245_v0 }
 0x527   :  { %v1247_v14 = vpop.f32.mrf.mxu0 }
 0x528   :  { %1272 = vst [vmem:[#allocation12 + $0x50] sm:$0xff] %v1247_v14 }
 0x529   :  { %v1249_v15 = vpop.f32.mrf.mxu0 }
 0x52a   :  { %1273 = vst [vmem:[#allocation12 + $0x58] sm:$0xff] %v1249_v15 }
 0x52b   :  { %v1253_v16 = vpop.f32.mrf.mxu0 }
 0x52c   :  { %1274 = vst [vmem:[#allocation12 + $0x60] sm:$0xff] %v1253_v16 }
 0x52d   :  { %v1255_v17 = vpop.f32.mrf.mxu0 }
 0x52e   :  { %1275 = vst [vmem:[#allocation12 + $0x68] sm:$0xff] %v1255_v17 }
 0x52f   :  { %v1257_v18 = vpop.f32.mrf.mxu0 }
 0x530   :  { %1276 = vst [vmem:[#allocation12 + $0x70] sm:$0xff] %v1257_v18 }
 0x531   :  { %v1259_v19 = vpop.f32.mrf.mxu0 }
 0x532   :  { %1277 = vst [vmem:[#allocation12 + $0x78] sm:$0xff] %v1259_v19 }
 0x533   :  { %1742 = shalt.err (!%p1739_p1)
}
 0x534   :  { %s1773_s22 = smov 256   ;;  %s1774_s23 = smov 16  }
 0x535   :  { %1289 = dma.vmem_to_hbm [thread:$0]  %s1284_s4, 2048, %s1874_s5, [#allocation5], %s1773_s22, %s1773_s22, %s1774_s23  }
 0x536   :  { %1757 = dma.done.wait [#allocation5], 2048  }
 0x537   :  { %1758 = vsyncadd [#allocation5], 4294965248 }
 0x538   :  { %1293 = vsyncpa [#allocation4], 1 }
 0x539   :  { %1294 = vsyncpa [#allocation7], 1 }
 0x53a   :  { %1295 = vsyncpa [#allocation10], 1 }
 0x53b   :  { %1296 = vsyncpa [#allocation5], 1 }

</bundles_post_ra>
